<compile_context>
chip_gen: v5e
topology: v5e:2x2
jax: 0.10.0
libtpu: 0.0.40
codegen_flags: <defaults>
</compile_context>

<pallas_src>
import math

import numpy as np
import jax
import jax.numpy as jnp
from jax.experimental import pallas as pl
from jax.experimental.pallas import tpu as pltpu


def _round_up(a, m):
    return -(-a // m) * m


# ----------------------------------------------------------------------------
# Kernels
# ----------------------------------------------------------------------------
def _fused_kernel(rows_ref, w_ref, bias_ref, out_ref):
    # rows_ref: (TN, L_pad); w_ref: (L_pad, P*D); bias_ref: (1, P*D); out: (TN, P*D)
    y = jnp.dot(rows_ref[...], w_ref[...], preferred_element_type=jnp.float32)
    out_ref[...] = (y + bias_ref[...].astype(jnp.float32)).astype(out_ref.dtype)


def _make_unfold_kernel(num_patches, stride, patch_len, d_model):
    # In-kernel unfold: x_ref (TN, L_pad); w_ref (patch_len, D); bias_ref (1, P*D);
    # out_ref (TN, P*D).  Static unroll over patches; each patch is a small dot
    # contracting over patch_len only (no FLOP inflation), output stays
    # lane-dense as one (TN, P*D) tile.
    def kernel(x_ref, w_ref, bias_ref, out_ref):
        w = w_ref[...]
        for p in range(num_patches):
            s = p * stride
            patch = x_ref[:, s:s + patch_len]
            y = jnp.dot(patch, w, preferred_element_type=jnp.float32)
            y = y + bias_ref[:, p * d_model:(p + 1) * d_model].astype(jnp.float32)
            out_ref[:, p * d_model:(p + 1) * d_model] = y.astype(out_ref.dtype)
    return kernel


# ----------------------------------------------------------------------------
# pallas_call wrapper (single grid axis over row tiles)
# ----------------------------------------------------------------------------
_SINGLE_BUFFER_OK = True  # flipped off if this JAX build rejects pipeline_mode


def _resident_spec(shape, single_buffer):
    # Grid-invariant operand: constant index_map, single-buffered when possible.
    if single_buffer:
        return pl.BlockSpec(shape, lambda i: (0, 0), pipeline_mode=pl.Buffered(1))
    return pl.BlockSpec(shape, lambda i: (0, 0))


def _run_tiled(kernel, x, w, bias, *, tile_rows, out_width, out_dtype,
               vmem_limit_bytes):
    """x: (R, Kx) row-tiled input; w/bias VMEM-resident; out: (R, out_width)."""
    global _SINGLE_BUFFER_OK
    R, Kx = x.shape
    assert R % tile_rows == 0
    grid = (R // tile_rows,)

    def build(single_buffer):
        return pl.pallas_call(
            kernel,
            out_shape=jax.ShapeDtypeStruct((R, out_width), out_dtype),
            grid_spec=pltpu.PrefetchScalarGridSpec(
                num_scalar_prefetch=0,
                grid=grid,
                in_specs=[
                    pl.BlockSpec((tile_rows, Kx), lambda i: (i, 0)),
                    _resident_spec(w.shape, single_buffer),
                    _resident_spec(bias.shape, single_buffer),
                ],
                out_specs=pl.BlockSpec((tile_rows, out_width), lambda i: (i, 0)),
            ),
            compiler_params=pltpu.CompilerParams(
                dimension_semantics=("parallel",),
                vmem_limit_bytes=vmem_limit_bytes,
            ),
        )

    if _SINGLE_BUFFER_OK:
        try:
            return build(True)(x, w, bias)
        except Exception:
            # Fallback for builds without BlockSpec(pipeline_mode=...); a genuine
            # kernel error will re-raise identically from the path below.
            _SINGLE_BUFFER_OK = False
    return build(False)(x, w, bias)


# ----------------------------------------------------------------------------
# Module-equivalent wrapper
# ----------------------------------------------------------------------------
def make_positional_embedding(d_model, max_len=5000):
    # Matches PositionalEmbedding buffer construction in the PyTorch module.
    position = jnp.arange(0, max_len, dtype=jnp.float32)[:, None]
    div_term = jnp.exp(
        jnp.arange(0, d_model, 2, dtype=jnp.float32)
        * -(math.log(10000.0) / d_model))
    pe = jnp.zeros((max_len, d_model), dtype=jnp.float32)
    pe = pe.at[:, 0::2].set(jnp.sin(position * div_term))
    pe = pe.at[:, 1::2].set(jnp.cos(position * div_term))
    return pe  # (max_len, d_model)


class PatchEmbeddingPallas:
    def __init__(self, d_model, patch_len, stride, padding, dropout, *, key,
                 compute_dtype=jnp.float32, out_dtype=jnp.float32,
                 fuse_unfold=None,
                 target_step_out_bytes=4 << 20,     # >=~4 MiB written per step
                 vmem_budget_bytes=24 << 20,        # budget for tiles (v7x-safe)
                 vmem_limit_bytes=48 << 20,         # explicit scoped-VMEM limit
                 fuse_weight_limit_bytes=4 << 20,
                 fuse_flop_inflation_limit=4.0,
                 max_len=5000):
        self.d_model = d_model
        self.patch_len = patch_len
        self.stride = stride
        self.padding = padding
        self.dropout = dropout
        self.compute_dtype = compute_dtype
        self.out_dtype = out_dtype
        self.fuse_unfold = fuse_unfold
        self.target_step_out_bytes = target_step_out_bytes
        self.vmem_budget_bytes = vmem_budget_bytes
        self.vmem_limit_bytes = vmem_limit_bytes
        self.fuse_weight_limit_bytes = fuse_weight_limit_bytes
        self.fuse_flop_inflation_limit = fuse_flop_inflation_limit

        # nn.Linear(patch_len, d_model, bias=False): weight (d_model, patch_len)
        bound = 1.0 / math.sqrt(patch_len)
        w = jax.random.uniform(key, (d_model, patch_len), dtype=jnp.float32,
                               minval=-bound, maxval=bound)
        self.w_t = w.T                                    # (patch_len, d_model)
        self.w_t_c = self.w_t.astype(compute_dtype)       # cached cast
        self.pe = make_positional_embedding(d_model, max_len)
        self._bias_cache = {}                             # P -> (1, P*D) f32
        self._wbig_cache = {}                             # (P, L_pad) -> (L_pad, P*D)
        # TODO(synk): dropout is a no-op here (eval mode); training-mode dropout
        # would need pltpu.prng_* inside the kernel.

    # -- cached helpers --------------------------------------------------------
    def _bias_row(self, P):
        b = self._bias_cache.get(P)
        if b is None:
            b = self.pe[:P, :].reshape(1, P * self.d_model)
            self._bias_cache[P] = b
        return b

    def _expanded_weight(self, P, L_pad):
        key = (P, L_pad)
        wb = self._wbig_cache.get(key)
        if wb is None:
            L, D = self.patch_len, self.d_model
            w3 = jnp.zeros((P, L_pad, D), jnp.float32)
            p_idx = jnp.arange(P)[:, None]
            l_idx = jnp.arange(L)[None, :]
            rows = p_idx * self.stride + l_idx             # (P, L)
            w3 = w3.at[p_idx, rows].set(jnp.broadcast_to(self.w_t[None], (P, L, D)))
            wb = (jnp.transpose(w3, (1, 0, 2)).reshape(L_pad, P * D)
                  .astype(self.compute_dtype))
            self._wbig_cache[key] = wb
        return wb

    # -- tile-row selection ----------------------------------------------------
    def _pick_tile_rows(self, N, row_in_bytes, row_out_bytes, resident_bytes):
        sub = 16 if np.dtype(self.compute_dtype).itemsize < 4 else 8
        per_row = 2 * (row_in_bytes + row_out_bytes)       # double-buffered tiles
        avail = max(self.vmem_budget_bytes - resident_bytes, per_row * sub)
        tn_budget = max(sub, (avail // per_row) // sub * sub)
        tn_target = _round_up(
            max(1, -(-self.target_step_out_bytes // max(row_out_bytes, 1))), sub)
        tn = min(tn_budget, tn_target)
        n_round = _round_up(N, sub)
        tn = min(tn, n_round)
        # keep >= 2 grid steps when possible (v7x megacore + I/O pipelining)
        if n_round >= 2 * sub:
            tn = min(tn, _round_up(-(-n_round // 2), sub))
        return max(tn, sub)

    # -- forward ---------------------------------------------------------------
    def __call__(self, x):
        # x: (B, n_vars, seq_len) float32
        B, n_vars, L_in = x.shape
        # ReplicationPad1d((0, padding)): replicate last element on the right
        x_pad = jnp.concatenate(
            [x, jnp.repeat(x[..., -1:], self.padding, axis=-1)], axis=-1)
        L_pad = L_in + self.padding
        P = (L_pad - self.patch_len) // self.stride + 1
        if P > self.pe.shape[0]:
            raise ValueError(
                f"num_patches {P} exceeds positional-embedding max_len "
                f"{self.pe.shape[0]}")
        N = B * n_vars
        D = self.d_model
        x_rows = x_pad.reshape(N, L_pad).astype(self.compute_dtype)
        bias = self._bias_row(P)                            # (1, P*D) f32, cached

        in_bytes = np.dtype(self.compute_dtype).itemsize
        out_bytes = np.dtype(self.out_dtype).itemsize

        fuse = self.fuse_unfold
        if fuse is None:
            w_big_bytes = L_pad * P * D * in_bytes
            inflation = L_pad / float(self.patch_len)       # extra MXU work if fused
            fuse = (w_big_bytes <= self.fuse_weight_limit_bytes
                    and inflation <= self.fuse_flop_inflation_limit)

        if fuse:
            w = self._expanded_weight(P, L_pad)             # (L_pad, P*D), cached
            kernel = _fused_kernel
        else:
            w = self.w_t_c                                  # (patch_len, D), cached
            kernel = _make_unfold_kernel(P, self.stride, self.patch_len, D)

        row_in = L_pad * in_bytes
        row_out = P * D * out_bytes
        resident = int(w.size) * w.dtype.itemsize + int(bias.size) * 4
        tn = self._pick_tile_rows(N, row_in, row_out, resident)

        n_pad = _round_up(N, tn)
        if n_pad != N:
            x_rows = jnp.pad(x_rows, ((0, n_pad - N), (0, 0)))

        out = _run_tiled(kernel, x_rows, w, bias,
                         tile_rows=tn, out_width=P * D, out_dtype=self.out_dtype,
                         vmem_limit_bytes=self.vmem_limit_bytes)
        out = out[:N].reshape(N, P, D)
        return out, n_vars


if __name__ == "__main__":
    key = jax.random.PRNGKey(0)
    k_w, k_x = jax.random.split(key)

    # small shapes consistent with the module
    B, n_vars, seq_len = 2, 4, 16
    d_model, patch_len, stride, padding, dropout = 32, 8, 4, 4, 0.1

    x = jax.random.normal(k_x, (B, n_vars, seq_len), dtype=jnp.float32)

    # plain-JAX reference
    def reference(module):
        x_pad = jnp.concatenate([x, jnp.repeat(x[..., -1:], padding, axis=-1)], -1)
        P = (seq_len + padding - patch_len) // stride + 1
        idx = jnp.arange(P)[:, None] * stride + jnp.arange(patch_len)[None, :]
        patches = x_pad[..., idx].reshape(B * n_vars, P, patch_len)
        return patches @ module.w_t + module.pe[:P][None]

    # 1) auto path (fused here: L_pad/patch_len = 2.5 <= 4), f32
    mod = PatchEmbeddingPallas(d_model, patch_len, stride, padding, dropout,
                               key=k_w)
    out_f, nv = mod(x)
    out_f = jax.block_until_ready(out_f)
    ref = reference(mod)
    P = ref.shape[1]
    assert out_f.shape == (B * n_vars, P, d_model)
    assert nv == n_vars
    assert jnp.allclose(out_f, ref, atol=1e-4, rtol=1e-4)

    # 2) in-kernel unfold path (default for realistic large-P configs), f32
    mod_u = PatchEmbeddingPallas(d_model, patch_len, stride, padding, dropout,
                                 key=k_w, fuse_unfold=False)
    out_u, _ = mod_u(x)
    out_u = jax.block_until_ready(out_u)
    assert jnp.allclose(out_u, ref, atol=1e-4, rtol=1e-4)

    # 3) bf16 compute + bf16 output (f32 MXU accumulation), unfold path
    mod_b = PatchEmbeddingPallas(d_model, patch_len, stride, padding, dropout,
                                 key=k_w, fuse_unfold=False,
                                 compute_dtype=jnp.bfloat16,
                                 out_dtype=jnp.bfloat16)
    out_b, _ = mod_b(x)
    out_b = jax.block_until_ready(out_b)
    assert jnp.allclose(out_b.astype(jnp.float32), ref, atol=5e-2, rtol=5e-2)

    print("KERNEL_OK")
</pallas_src>

<mosaic_0001>
module attributes {stable_mosaic.version = 11 : i64} {
  func.func @_fused_kernel(%arg0: i32, %arg1: memref<8x20xf32, #tpu.memory_space<vmem>>, %arg2: memref<20x128xf32, #tpu.memory_space<vmem>>, %arg3: memref<1x128xf32, #tpu.memory_space<vmem>>, %arg4: memref<8x128xf32, #tpu.memory_space<vmem>>) attributes {dimension_semantics = [#tpu.dimension_semantics<parallel>], iteration_bounds = array<i64: 1>, scalar_prefetch = 0 : i64, scratch_operands = 0 : i64, tpu.core_type = #tpu.core_type<tc>, window_params = [{transform_indices = @transform_0, window_bounds = array<i64: 8, 20>}, {pipeline_mode = #tpu.pipeline_mode<synchronous>, transform_indices = @transform_1, window_bounds = array<i64: 20, 128>}, {pipeline_mode = #tpu.pipeline_mode<synchronous>, transform_indices = @transform_2, window_bounds = array<i64: 1, 128>}, {transform_indices = @transform_3, window_bounds = array<i64: 8, 128>}]} {
    %c0 = arith.constant 0 : index
    %c0_0 = arith.constant 0 : index
    %0 = vector.load %arg1[%c0, %c0_0] : memref<8x20xf32, #tpu.memory_space<vmem>>, vector<8x20xf32>
    %c0_1 = arith.constant 0 : index
    %c0_2 = arith.constant 0 : index
    %1 = vector.load %arg2[%c0_1, %c0_2] : memref<20x128xf32, #tpu.memory_space<vmem>>, vector<20x128xf32>
    %cst = arith.constant dense<0.000000e+00> : vector<8x128xf32>
    %2 = tpu.matmul %0, %1, %cst {dimension_numbers = #tpu.dot_dimension_numbers<[1], [0], [0], [1], [0, 0, 1, 1], [], []>} : vector<8x20xf32>, vector<20x128xf32>, vector<8x128xf32> -> vector<8x128xf32>
    %c0_3 = arith.constant 0 : index
    %c0_4 = arith.constant 0 : index
    %3 = vector.load %arg3[%c0_3, %c0_4] : memref<1x128xf32, #tpu.memory_space<vmem>>, vector<1x128xf32>
    %4 = vector.broadcast %3 : vector<1x128xf32> to vector<8x128xf32>
    %5 = arith.addf %2, %4 : vector<8x128xf32>
    %c0_5 = arith.constant 0 : index
    %c0_6 = arith.constant 0 : index
    %6 = vector.load %arg4[%c0_5, %c0_6] : memref<8x128xf32, #tpu.memory_space<vmem>>, vector<8x128xf32>
    tpu.vector_store %arg4[%c0_5, %c0_6], %5 {strides = array<i32>} : memref<8x128xf32, #tpu.memory_space<vmem>>, vector<8x128xf32>,
    return
  }
  func.func @transform_0(%arg0: i32) -> (i32, i32) {
    %c0_i32 = arith.constant 0 : i32
    %c0_i32_0 = arith.constant 0 : i32
    return %arg0, %c0_i32 : i32, i32
  }
  func.func @transform_1(%arg0: i32) -> (i32, i32) {
    %c0_i32 = arith.constant 0 : i32
    %c0_i32_0 = arith.constant 0 : i32
    %c0_i32_1 = arith.constant 0 : i32
    return %c0_i32, %c0_i32_0 : i32, i32
  }
  func.func @transform_2(%arg0: i32) -> (i32, i32) {
    %c0_i32 = arith.constant 0 : i32
    %c0_i32_0 = arith.constant 0 : i32
    %c0_i32_1 = arith.constant 0 : i32
    return %c0_i32, %c0_i32_0 : i32, i32
  }
  func.func @transform_3(%arg0: i32) -> (i32, i32) {
    %c0_i32 = arith.constant 0 : i32
    %c0_i32_0 = arith.constant 0 : i32
    return %arg0, %c0_i32 : i32, i32
  }
}

module attributes {stable_mosaic.version = 11 : i64} {
  func.func @_fused_kernel(%arg0: i32, %arg1: memref<8x20xf32, #tpu.memory_space<vmem>>, %arg2: memref<20x128xf32, #tpu.memory_space<vmem>>, %arg3: memref<1x128xf32, #tpu.memory_space<vmem>>, %arg4: memref<8x128xf32, #tpu.memory_space<vmem>>) attributes {dimension_semantics = [#tpu.dimension_semantics<parallel>], iteration_bounds = array<i64: 1>, scalar_prefetch = 0 : i64, scratch_operands = 0 : i64, tpu.core_type = #tpu.core_type<tc>, window_params = [{transform_indices = @transform_0, window_bounds = array<i64: 8, 20>}, {pipeline_mode = #tpu.pipeline_mode<synchronous>, transform_indices = @transform_1, window_bounds = array<i64: 20, 128>}, {pipeline_mode = #tpu.pipeline_mode<synchronous>, transform_indices = @transform_2, window_bounds = array<i64: 1, 128>}, {transform_indices = @transform_3, window_bounds = array<i64: 8, 128>}]} {
    %c0 = arith.constant 0 : index
    %c0_0 = arith.constant 0 : index
    %0 = vector.load %arg1[%c0, %c0_0] : memref<8x20xf32, #tpu.memory_space<vmem>>, vector<8x20xf32>
    %c0_1 = arith.constant 0 : index
    %c0_2 = arith.constant 0 : index
    %1 = vector.load %arg2[%c0_1, %c0_2] : memref<20x128xf32, #tpu.memory_space<vmem>>, vector<20x128xf32>
    %cst = arith.constant dense<0.000000e+00> : vector<8x128xf32>
    %2 = tpu.matmul %0, %1, %cst {dimension_numbers = #tpu.dot_dimension_numbers<[1], [0], [0], [1], [0, 0, 1, 1], [], []>} : vector<8x20xf32>, vector<20x128xf32>, vector<8x128xf32> -> vector<8x128xf32>
    %c0_3 = arith.constant 0 : index
    %c0_4 = arith.constant 0 : index
    %3 = vector.load %arg3[%c0_3, %c0_4] : memref<1x128xf32, #tpu.memory_space<vmem>>, vector<1x128xf32>
    %4 = vector.broadcast %3 : vector<1x128xf32> to vector<8x128xf32>
    %5 = arith.addf %2, %4 : vector<8x128xf32>
    %c0_5 = arith.constant 0 : index
    %c0_6 = arith.constant 0 : index
    %6 = vector.load %arg4[%c0_5, %c0_6] : memref<8x128xf32, #tpu.memory_space<vmem>>, vector<8x128xf32>
    tpu.vector_store %arg4[%c0_5, %c0_6], %5 {strides = array<i32>} : memref<8x128xf32, #tpu.memory_space<vmem>>, vector<8x128xf32>,
    return
  }
  func.func @transform_0(%arg0: i32) -> (i32, i32) {
    %c0_i32 = arith.constant 0 : i32
    %c0_i32_0 = arith.constant 0 : i32
    return %arg0, %c0_i32 : i32, i32
  }
  func.func @transform_1(%arg0: i32) -> (i32, i32) {
    %c0_i32 = arith.constant 0 : i32
    %c0_i32_0 = arith.constant 0 : i32
    %c0_i32_1 = arith.constant 0 : i32
    return %c0_i32, %c0_i32_0 : i32, i32
  }
  func.func @transform_2(%arg0: i32) -> (i32, i32) {
    %c0_i32 = arith.constant 0 : i32
    %c0_i32_0 = arith.constant 0 : i32
    %c0_i32_1 = arith.constant 0 : i32
    return %c0_i32, %c0_i32_0 : i32, i32
  }
  func.func @transform_3(%arg0: i32) -> (i32, i32) {
    %c0_i32 = arith.constant 0 : i32
    %c0_i32_0 = arith.constant 0 : i32
    return %arg0, %c0_i32 : i32, i32
  }
}

</mosaic_0001>

<bundles_post_ra>
// kernel: tpu_custom_call.1
= control target key start
LH: loop header
LB: loop body
LE: loop exit
PB: predicated region body
PF: predicated region fallthrough
CT: control target
= control target key end

     0   :  { %8 = vsyncpa [#allocation3], 0  ;;  %s223_s0 = inlined_call_operand.hbm [shape: f32[8,20], index: 0, kind: input, shape index: {}]   ;;  %s224_s1 = inlined_call_operand.hbm [shape: f32[20,128], index: 1, kind: input, shape index: {}]   ;;  %s225_s2 = inlined_call_operand.vmem [shape: f32[1,128], index: 2, kind: input, shape index: {}]   ;;  %s226_s3 = inlined_call_operand.hbm [shape: f32[8,128], index: 3, kind: output, shape index: {}]  }
   0x1   :  { %9 = vsyncpa [#allocation6], 0 }
   0x2   :  { %10 = vsyncpa [#allocation4], 0  ;;  %s16_s14 = sshll.u32 %s223_s0, 4  ;;  %s186_s15 = smov [#allocation2]   ;;  %s17_s14 = int_to_ptr.hbm [resolvable:$true] %s16_s14 }
   0x3   :  { %s18_s16 = sshll.u32 %s186_s15, 4  ;;  %s26_s19 = sshll.u32 %s224_s1, 4  ;;  %s19_s16 = int_to_ptr.vmem [resolvable:$true] %s18_s16  ;;  %s27_s19 = int_to_ptr.hbm [resolvable:$true] %s26_s19 }
   0x4   :  { %21 = dma.hbm_to_vmem [thread:$0]  %s17_s14, 128, %s19_s16, [#allocation3]  }
   0x5   :  { %s187_s20 = smov [#allocation5]   ;;  %s188_s22 = smov 128  }
   0x6   :  { %s28_s21 = sshll.u32 %s187_s20, 4  ;;  %s189_s23 = smov 8   ;;  %s29_s21 = int_to_ptr.vmem [resolvable:$true] %s28_s21 }
   0x7   :  { %34 = dma.hbm_to_vmem [thread:$0]  %s27_s19, 384, %s29_s21, [#allocation6], %s188_s22, %s188_s22, %s189_s23  }
   0x8   :  { %180 = dma.done.wait [#allocation3], 128  }
   0x9   :  { %181 = vsyncadd [#allocation3], 4294967168 }
   0xa   :  { %182 = dma.done.wait [#allocation6], 384  }
   0xb   :  { %183 = vsyncadd [#allocation6], 4294966912  ;;  %vm57_vm0 = vcmask 1043456   ;;  %v48_v0 = vld [vmem:[#allocation5 + $0x10] sm:$0xf]  ;;  %v47_v1 = vld [vmem:[#allocation5 + $0x8] sm:$0xff] }
   0xc   :  { %100 = vmatpush.msk.msra.mxu0 %vm57_vm0, %v48_v0  ;;  %v46_v2 = vld [vmem:[#allocation5] sm:$0xff]  ;;  %v45_v3 = vld [vmem:[#allocation2] sm:$0xff]  ;;  %vm53_vm1 = vcmask 162816   ;;  %s190_s24 = smov [#allocation7]   ;;  %s89_s28 = sshll.u32 %s226_s3, 4  ;;  %s90_s28 = int_to_ptr.hbm [resolvable:$true] %s89_s28 }
   0xd   :  { %v107_v4 = vld [vmem:[%s225_s2] ss:$0 sm:$0xff]  ;;  %s87_s25 = sshll.u32 %s190_s24, 4  ;;  %s88_s25 = int_to_ptr.vmem [resolvable:$true] %s87_s25 }
   0xe   :  { %75 = vmatpush.msra.mxu0 %v47_v1 }
  0x10   :  { %76 = vmatpush.msra.mxu0 %v46_v2 }
  0x11   :  { %101 = vmatmul.msk.f32.vlgmr.msra.gmra.mxu0 %vm53_vm1, %v45_v3 }
  0x8e   :  { %v78_v5 = vpop.f32.mrf.mxu0 }
  0x8f   :  { %v79_v6 = vadd.f32 %v107_v4, %v78_v5 }
  0x91   :  { %81 = vst [vmem:[#allocation7] sm:$0xff] %v79_v6 }
  0x92   :  { %92 = dma.vmem_to_hbm [thread:$0]  %s88_s25, 128, %s90_s28, [#allocation4]  }
  0x93   :  { %184 = dma.done.wait [#allocation4], 128  }
  0x94   :  { %185 = vsyncadd [#allocation4], 4294967168 }
  0x95   :  { %97 = vsyncpa [#allocation3], 1 }
  0x96   :  { %98 = vsyncpa [#allocation6], 1 }
  0x97   :  { %99 = vsyncpa [#allocation4], 1 }

// kernel: tpu_custom_call.1
= control target key start
LH: loop header
LB: loop body
LE: loop exit
PB: predicated region body
PF: predicated region fallthrough
CT: control target
= control target key end

     0   :  { %8 = vsyncpa [#allocation3], 0  ;;  %s223_s0 = inlined_call_operand.hbm [shape: f32[8,20], index: 0, kind: input, shape index: {}]   ;;  %s224_s1 = inlined_call_operand.hbm [shape: f32[20,128], index: 1, kind: input, shape index: {}]   ;;  %s225_s2 = inlined_call_operand.vmem [shape: f32[1,128], index: 2, kind: input, shape index: {}]   ;;  %s226_s3 = inlined_call_operand.hbm [shape: f32[8,128], index: 3, kind: output, shape index: {}]  }
   0x1   :  { %9 = vsyncpa [#allocation6], 0 }
   0x2   :  { %10 = vsyncpa [#allocation4], 0  ;;  %s16_s14 = sshll.u32 %s223_s0, 4  ;;  %s186_s15 = smov [#allocation2]   ;;  %s17_s14 = int_to_ptr.hbm [resolvable:$true] %s16_s14 }
   0x3   :  { %s18_s16 = sshll.u32 %s186_s15, 4  ;;  %s26_s19 = sshll.u32 %s224_s1, 4  ;;  %s19_s16 = int_to_ptr.vmem [resolvable:$true] %s18_s16  ;;  %s27_s19 = int_to_ptr.hbm [resolvable:$true] %s26_s19 }
   0x4   :  { %21 = dma.hbm_to_vmem [thread:$0]  %s17_s14, 128, %s19_s16, [#allocation3]  }
   0x5   :  { %s187_s20 = smov [#allocation5]   ;;  %s188_s22 = smov 128  }
   0x6   :  { %s28_s21 = sshll.u32 %s187_s20, 4  ;;  %s189_s23 = smov 8   ;;  %s29_s21 = int_to_ptr.vmem [resolvable:$true] %s28_s21 }
   0x7   :  { %34 = dma.hbm_to_vmem [thread:$0]  %s27_s19, 384, %s29_s21, [#allocation6], %s188_s22, %s188_s22, %s189_s23  }
   0x8   :  { %180 = dma.done.wait [#allocation3], 128  }
   0x9   :  { %181 = vsyncadd [#allocation3], 4294967168 }
   0xa   :  { %182 = dma.done.wait [#allocation6], 384  }
   0xb   :  { %183 = vsyncadd [#allocation6], 4294966912  ;;  %vm57_vm0 = vcmask 1043456   ;;  %v48_v0 = vld [vmem:[#allocation5 + $0x10] sm:$0xf]  ;;  %v47_v1 = vld [vmem:[#allocation5 + $0x8] sm:$0xff] }
   0xc   :  { %100 = vmatpush.msk.msra.mxu0 %vm57_vm0, %v48_v0  ;;  %v46_v2 = vld [vmem:[#allocation5] sm:$0xff]  ;;  %v45_v3 = vld [vmem:[#allocation2] sm:$0xff]  ;;  %vm53_vm1 = vcmask 162816   ;;  %s190_s24 = smov [#allocation7]   ;;  %s89_s28 = sshll.u32 %s226_s3, 4  ;;  %s90_s28 = int_to_ptr.hbm [resolvable:$true] %s89_s28 }
   0xd   :  { %v107_v4 = vld [vmem:[%s225_s2] ss:$0 sm:$0xff]  ;;  %s87_s25 = sshll.u32 %s190_s24, 4  ;;  %s88_s25 = int_to_ptr.vmem [resolvable:$true] %s87_s25 }
   0xe   :  { %75 = vmatpush.msra.mxu0 %v47_v1 }
  0x10   :  { %76 = vmatpush.msra.mxu0 %v46_v2 }
  0x11   :  { %101 = vmatmul.msk.f32.vlgmr.msra.gmra.mxu0 %vm53_vm1, %v45_v3 }
  0x8e   :  { %v78_v5 = vpop.f32.mrf.mxu0 }
  0x8f   :  { %v79_v6 = vadd.f32 %v107_v4, %v78_v5 }
  0x91   :  { %81 = vst [vmem:[#allocation7] sm:$0xff] %v79_v6 }
  0x92   :  { %92 = dma.vmem_to_hbm [thread:$0]  %s88_s25, 128, %s90_s28, [#allocation4]  }
  0x93   :  { %184 = dma.done.wait [#allocation4], 128  }
  0x94   :  { %185 = vsyncadd [#allocation4], 4294967168 }
  0x95   :  { %97 = vsyncpa [#allocation3], 1 }
  0x96   :  { %98 = vsyncpa [#allocation6], 1 }
  0x97   :  { %99 = vsyncpa [#allocation4], 1 }

</bundles_post_ra>
